<compile_context>
chip_gen: v7x
topology: tpu7x:2x2x1
jax: 0.10.0
libtpu: 0.0.40
codegen_flags: <defaults>
</compile_context>

<pallas_src>
import functools

import jax
import jax.numpy as jnp
from jax.experimental import pallas as pl
from jax.experimental.pallas import tpu as pltpu


def _round_up(x, m):
    return (x + m - 1) // m * m


_VMEM_CAP = 48 << 20  # below v7x's 64 MiB physical per-TC VMEM; well under v5e/v6e's 128 MiB


def vae_kernel(x_ref, eps_ref,
               we1_ref, be1_ref, wml_ref, bml_ref,
               wd1_ref, bd1_ref, wd2_ref, bd2_ref,
               xrec_ref, ml_ref, *, zp):
    # x arrives f32 (no wrapper-side pad+cast pre-pass); cast to bf16 only at the MXU input.
    x_bf = x_ref[...].astype(jnp.bfloat16)

    # ---- encoder: h = relu(x @ We1 + be1)   (bf16 MXU, f32 accumulation, f32 elementwise) ----
    h = jnp.dot(x_bf, we1_ref[...], preferred_element_type=jnp.float32)
    h = jnp.maximum(h + be1_ref[...], 0.0)

    # ---- fused mu/logvar projection: single (HP, 2*ZP) matmul; split at 128-lane boundary ----
    ml = jnp.dot(h.astype(jnp.bfloat16), wml_ref[...],
                 preferred_element_type=jnp.float32) + bml_ref[...]
    mu = ml[:, :zp]
    logvar = ml[:, zp:]

    # ---- reparameterization: z = mu + eps * exp(0.5 * logvar)   (f32 elementwise) ----
    # eps pad lanes are zero and wd1 pad rows are zero, so padded latent lanes never
    # contaminate the decoder output.
    std = jnp.exp(0.5 * logvar)
    z = mu + eps_ref[...] * std

    # ---- decoder ----
    hd = jnp.dot(z.astype(jnp.bfloat16), wd1_ref[...],
                 preferred_element_type=jnp.float32)
    hd = jnp.maximum(hd + bd1_ref[...], 0.0)
    logits = jnp.dot(hd.astype(jnp.bfloat16), wd2_ref[...],
                     preferred_element_type=jnp.float32) + bd2_ref[...]

    # sigmoid via tanh: one EUP op/elem instead of exp + reciprocal.
    xrec_ref[...] = (0.5 * (1.0 + jnp.tanh(0.5 * logits))).astype(xrec_ref.dtype)
    # packed [mu | logvar], lane-dense bf16 store.
    ml_ref[...] = ml.astype(ml_ref.dtype)


def prepare_params(params):
    """One-time pad / fuse / bf16-cast of the VAE weights (hoisted off the forward path)."""
    (we1, be1, wmu, bmu, wlv, blv, wd1, bd1, wd2, bd2) = params
    D, HID = we1.shape
    Z = wmu.shape[1]
    # Lane-dense padded widths.  Deliberately 128, NOT 256 (memory-bound kernel — see header).
    HP = _round_up(HID, 128)
    ZP = _round_up(Z, 128)
    wdt = jnp.bfloat16

    we1_p = jnp.zeros((D, HP), wdt).at[:, :HID].set(we1.astype(wdt))
    be1_p = jnp.zeros((1, HP), jnp.float32).at[:, :HID].set(
        be1.reshape(1, -1).astype(jnp.float32))
    wml_p = (jnp.zeros((HP, 2 * ZP), wdt)
             .at[:HID, :Z].set(wmu.astype(wdt))
             .at[:HID, ZP:ZP + Z].set(wlv.astype(wdt)))
    bml_p = (jnp.zeros((1, 2 * ZP), jnp.float32)
             .at[:, :Z].set(bmu.reshape(1, -1).astype(jnp.float32))
             .at[:, ZP:ZP + Z].set(blv.reshape(1, -1).astype(jnp.float32)))
    wd1_p = jnp.zeros((ZP, HP), wdt).at[:Z, :HID].set(wd1.astype(wdt))
    bd1_p = jnp.zeros((1, HP), jnp.float32).at[:, :HID].set(
        bd1.reshape(1, -1).astype(jnp.float32))
    wd2_p = jnp.zeros((HP, D), wdt).at[:HID, :].set(wd2.astype(wdt))
    bd2_p = bd2.reshape(1, D).astype(jnp.float32)

    weights = (we1_p, be1_p, wml_p, bml_p, wd1_p, bd1_p, wd2_p, bd2_p)
    return {"weights": weights, "D": D, "HID": HID, "Z": Z, "HP": HP, "ZP": ZP}


def _tile_footprint_bytes(tb, D, HP, ZP, weight_bytes):
    io_in = tb * (D * 4 + ZP * 4)               # x (f32) + eps (f32) input tiles
    io_out = tb * (D * 2 + 2 * ZP * 2)          # bf16 reconstruction + packed mu|logvar tiles
    interm = tb * (D + 2 * HP + 4 * ZP) * 4     # f32 temporaries: h, hd, logits, ml, z/std
    # weights are double-buffered by the default pipeliner (tiny at these sizes)
    return 2 * weight_bytes + 2 * (io_in + io_out) + interm


def vae_forward(x_nchw, eps, prepped):
    """x_nchw: (B, C, H, W) float32.  eps: (B, Z) float32 ~ N(0,1).  prepped: prepare_params()."""
    B, C, H, W = x_nchw.shape
    D, Z, HP, ZP = prepped["D"], prepped["Z"], prepped["HP"], prepped["ZP"]
    assert C * H * W == D and eps.shape == (B, Z)
    weights = prepped["weights"]
    weight_bytes = sum(int(a.size) * a.dtype.itemsize for a in weights)

    # ---- batch tiling: biggest tile that fits the VMEM budget, capped at 512 rows ----
    tb_budget = 8
    for cand in (512, 384, 256, 128, 64, 32, 16, 8):
        if _tile_footprint_bytes(cand, D, HP, ZP, weight_bytes) + (4 << 20) <= _VMEM_CAP:
            tb_budget = cand
            break

    B8 = _round_up(B, 8)
    if B8 > tb_budget:
        TB = tb_budget
    elif B8 >= 16:
        # keep >= 2 grid steps so the "parallel" batch axis can shard across both v7x
        # TensorCores (and input/output tiles have something to pipeline against)
        TB = _round_up(B8, 16) // 2
    else:
        TB = B8
    BP = _round_up(B8, TB)
    grid = (BP // TB,)

    # ---- inputs: x stays f32 (reshape is free); pad rows only when needed ----
    x_flat = x_nchw.reshape(B, D).astype(jnp.float32)
    if BP != B:
        x_flat = jnp.zeros((BP, D), jnp.float32).at[:B].set(x_flat)
    eps_p = jnp.zeros((BP, ZP), jnp.float32).at[:B, :Z].set(eps.astype(jnp.float32))

    def tile_spec(cols):
        return pl.BlockSpec((TB, cols), lambda i: (i, 0))

    def resident_spec(arr):
        # whole-array block + constant index map -> weights stay VMEM-resident across tiles
        return pl.BlockSpec(arr.shape, lambda i: (0, 0))

    in_arrays = (x_flat, eps_p) + weights
    in_specs = [tile_spec(D), tile_spec(ZP)] + [resident_spec(a) for a in weights]

    out_shapes = (
        jax.ShapeDtypeStruct((BP, D), jnp.bfloat16),        # reconstruction (bf16 store)
        jax.ShapeDtypeStruct((BP, 2 * ZP), jnp.bfloat16),   # packed [mu | logvar]
    )
    out_specs = (tile_spec(D), tile_spec(2 * ZP))

    vmem_limit = int(min(
        max(_tile_footprint_bytes(TB, D, HP, ZP, weight_bytes) + (4 << 20), 16 << 20),
        _VMEM_CAP))

    flops = 2 * BP * (D * HP + HP * 2 * ZP + ZP * HP + HP * D)
    cost = pl.CostEstimate(
        flops=int(flops),
        transcendentals=int(BP * (ZP + D)),   # exp per latent lane + tanh per output element
        bytes_accessed=int(weight_bytes + BP * D * 4 + BP * ZP * 4
                           + BP * D * 2 + BP * 2 * ZP * 2),
    )

    xrec_p, ml_p = pl.pallas_call(
        functools.partial(vae_kernel, zp=ZP),
        out_shape=out_shapes,
        grid=grid,
        in_specs=in_specs,
        out_specs=out_specs,
        compiler_params=pltpu.CompilerParams(
            dimension_semantics=("parallel",),
            vmem_limit_bytes=vmem_limit),
        cost_estimate=cost,
    )(*in_arrays)

    x_rec = xrec_p[:B].reshape(B, C, H, W)            # bf16; cast downstream if f32 is needed
    mu = ml_p[:B, :Z].astype(jnp.float32)             # tiny -> cast back to f32 for KL math
    logvar = ml_p[:B, ZP:ZP + Z].astype(jnp.float32)
    return x_rec, mu, logvar


def vae_reference(x_nchw, eps, params):
    """Pure-JAX f32 reference with identical semantics (for correctness check)."""
    B, C, H, W = x_nchw.shape
    D = C * H * W
    (we1, be1, wmu, bmu, wlv, blv, wd1, bd1, wd2, bd2) = params
    xf = x_nchw.reshape(B, D)
    h = jnp.maximum(xf @ we1 + be1, 0.0)
    mu = h @ wmu + bmu
    logvar = h @ wlv + blv
    z = mu + eps * jnp.exp(0.5 * logvar)
    hd = jnp.maximum(z @ wd1 + bd1, 0.0)
    xr = jax.nn.sigmoid(hd @ wd2 + bd2)
    return xr.reshape(B, C, H, W), mu, logvar


def init_params(key, D, HID, Z):
    ks = jax.random.split(key, 10)
    scale = 0.02
    we1 = scale * jax.random.normal(ks[0], (D, HID), jnp.float32)
    be1 = jnp.zeros((1, HID), jnp.float32)
    wmu = scale * jax.random.normal(ks[1], (HID, Z), jnp.float32)
    bmu = jnp.zeros((1, Z), jnp.float32)
    wlv = scale * jax.random.normal(ks[2], (HID, Z), jnp.float32)
    blv = jnp.zeros((1, Z), jnp.float32)
    wd1 = scale * jax.random.normal(ks[3], (Z, HID), jnp.float32)
    bd1 = jnp.zeros((1, HID), jnp.float32)
    wd2 = scale * jax.random.normal(ks[4], (HID, D), jnp.float32)
    bd2 = jnp.zeros((1, D), jnp.float32)
    return (we1, be1, wmu, bmu, wlv, blv, wd1, bd1, wd2, bd2)


if __name__ == "__main__":
    key = jax.random.PRNGKey(0)
    k_x, k_eps, k_p = jax.random.split(key, 3)

    B, C, H, W = 2, 4, 16, 16
    D = C * H * W          # 1024
    HID, Z = 32, 8

    x = jax.random.uniform(k_x, (B, C, H, W), jnp.float32)
    eps = jax.random.normal(k_eps, (B, Z), jnp.float32)   # role of torch.randn_like(std)
    params = init_params(k_p, D, HID, Z)

    # One-time weight preparation (pad / fuse / bf16-cast), off the per-forward path.
    prepped = prepare_params(params)
    jax.block_until_ready(prepped["weights"])

    x_rec, mu, logvar = vae_forward(x, eps, prepped)
    jax.block_until_ready((x_rec, mu, logvar))

    assert x_rec.shape == (B, C, H, W)
    assert mu.shape == (B, Z) and logvar.shape == (B, Z)

    # Numerical check vs. f32 reference (kernel uses bf16 weights/stores -> loose tolerance).
    xr_ref, mu_ref, lv_ref = vae_reference(x, eps, params)
    assert jnp.allclose(x_rec.astype(jnp.float32), xr_ref, atol=2e-2, rtol=2e-2)
    assert jnp.allclose(mu, mu_ref, atol=2e-2, rtol=2e-2)
    assert jnp.allclose(logvar, lv_ref, atol=2e-2, rtol=2e-2)

    print("KERNEL_OK")
</pallas_src>

<mosaic_0001>
module attributes {stable_mosaic.version = 11 : i64} {
  func.func @vae_kernel(%arg0: i32, %arg1: memref<8x1024xf32, #tpu.memory_space<vmem>>, %arg2: memref<8x128xf32, #tpu.memory_space<vmem>>, %arg3: memref<1024x128xbf16, #tpu.memory_space<vmem>>, %arg4: memref<1x128xf32, #tpu.memory_space<vmem>>, %arg5: memref<128x256xbf16, #tpu.memory_space<vmem>>, %arg6: memref<1x256xf32, #tpu.memory_space<vmem>>, %arg7: memref<128x128xbf16, #tpu.memory_space<vmem>>, %arg8: memref<1x128xf32, #tpu.memory_space<vmem>>, %arg9: memref<128x1024xbf16, #tpu.memory_space<vmem>>, %arg10: memref<1x1024xf32, #tpu.memory_space<vmem>>, %arg11: memref<8x1024xbf16, #tpu.memory_space<vmem>>, %arg12: memref<8x256xbf16, #tpu.memory_space<vmem>>) attributes {dimension_semantics = [#tpu.dimension_semantics<parallel>], iteration_bounds = array<i64: 1>, scalar_prefetch = 0 : i64, scratch_operands = 0 : i64, tpu.core_type = #tpu.core_type<tc>, window_params = [{transform_indices = @transform_0, window_bounds = array<i64: 8, 1024>}, {transform_indices = @transform_1, window_bounds = array<i64: 8, 128>}, {pipeline_mode = #tpu.pipeline_mode<synchronous>, transform_indices = @transform_2, window_bounds = array<i64: 1024, 128>}, {pipeline_mode = #tpu.pipeline_mode<synchronous>, transform_indices = @transform_3, window_bounds = array<i64: 1, 128>}, {pipeline_mode = #tpu.pipeline_mode<synchronous>, transform_indices = @transform_4, window_bounds = array<i64: 128, 256>}, {pipeline_mode = #tpu.pipeline_mode<synchronous>, transform_indices = @transform_5, window_bounds = array<i64: 1, 256>}, {pipeline_mode = #tpu.pipeline_mode<synchronous>, transform_indices = @transform_6, window_bounds = array<i64: 128, 128>}, {pipeline_mode = #tpu.pipeline_mode<synchronous>, transform_indices = @transform_7, window_bounds = array<i64: 1, 128>}, {pipeline_mode = #tpu.pipeline_mode<synchronous>, transform_indices = @transform_8, window_bounds = array<i64: 128, 1024>}, {pipeline_mode = #tpu.pipeline_mode<synchronous>, transform_indices = @transform_9, window_bounds = array<i64: 1, 1024>}, {transform_indices = @transform_10, window_bounds = array<i64: 8, 1024>}, {transform_indices = @transform_11, window_bounds = array<i64: 8, 256>}]} {
    %c0 = arith.constant 0 : index
    %c0_0 = arith.constant 0 : index
    %0 = vector.load %arg1[%c0, %c0_0] : memref<8x1024xf32, #tpu.memory_space<vmem>>, vector<8x1024xf32>
    %1 = arith.truncf %0 : vector<8x1024xf32> to vector<8x1024xbf16>
    %c0_1 = arith.constant 0 : index
    %c0_2 = arith.constant 0 : index
    %2 = vector.load %arg3[%c0_1, %c0_2] : memref<1024x128xbf16, #tpu.memory_space<vmem>>, vector<1024x128xbf16>
    %cst = arith.constant dense<0.000000e+00> : vector<8x128xf32>
    %3 = tpu.matmul %1, %2, %cst {dimension_numbers = #tpu.dot_dimension_numbers<[1], [0], [0], [1], [0, 0, 1, 1], [], []>} : vector<8x1024xbf16>, vector<1024x128xbf16>, vector<8x128xf32> -> vector<8x128xf32>
    %c0_3 = arith.constant 0 : index
    %c0_4 = arith.constant 0 : index
    %4 = vector.load %arg4[%c0_3, %c0_4] : memref<1x128xf32, #tpu.memory_space<vmem>>, vector<1x128xf32>
    %5 = vector.broadcast %4 : vector<1x128xf32> to vector<8x128xf32>
    %6 = arith.addf %3, %5 : vector<8x128xf32>
    %cst_5 = arith.constant 0.000000e+00 : f32
    %7 = vector.broadcast %cst_5 : f32 to vector<8x128xf32>
    %8 = arith.maximumf %6, %7 : vector<8x128xf32>
    %9 = arith.truncf %8 : vector<8x128xf32> to vector<8x128xbf16>
    %c0_6 = arith.constant 0 : index
    %c0_7 = arith.constant 0 : index
    %10 = vector.load %arg5[%c0_6, %c0_7] : memref<128x256xbf16, #tpu.memory_space<vmem>>, vector<128x256xbf16>
    %cst_8 = arith.constant dense<0.000000e+00> : vector<8x256xf32>
    %11 = tpu.matmul %9, %10, %cst_8 {dimension_numbers = #tpu.dot_dimension_numbers<[1], [0], [0], [1], [0, 0, 1, 1], [], []>} : vector<8x128xbf16>, vector<128x256xbf16>, vector<8x256xf32> -> vector<8x256xf32>
    %c0_9 = arith.constant 0 : index
    %c0_10 = arith.constant 0 : index
    %12 = vector.load %arg6[%c0_9, %c0_10] : memref<1x256xf32, #tpu.memory_space<vmem>>, vector<1x256xf32>
    %13 = vector.broadcast %12 : vector<1x256xf32> to vector<8x256xf32>
    %14 = arith.addf %11, %13 : vector<8x256xf32>
    %15 = vector.extract_strided_slice %14 {offsets = [0, 0], sizes = [8, 128], strides = [1, 1]} : vector<8x256xf32> to vector<8x128xf32>
    %16 = vector.extract_strided_slice %14 {offsets = [0, 128], sizes = [8, 128], strides = [1, 1]} : vector<8x256xf32> to vector<8x128xf32>
    %cst_11 = arith.constant 5.000000e-01 : f32
    %17 = vector.broadcast %cst_11 : f32 to vector<8x128xf32>
    %18 = arith.mulf %17, %16 : vector<8x128xf32>
    %19 = math.exp %18 : vector<8x128xf32>
    %c0_12 = arith.constant 0 : index
    %c0_13 = arith.constant 0 : index
    %20 = vector.load %arg2[%c0_12, %c0_13] : memref<8x128xf32, #tpu.memory_space<vmem>>, vector<8x128xf32>
    %21 = arith.mulf %20, %19 : vector<8x128xf32>
    %22 = arith.addf %15, %21 : vector<8x128xf32>
    %23 = arith.truncf %22 : vector<8x128xf32> to vector<8x128xbf16>
    %c0_14 = arith.constant 0 : index
    %c0_15 = arith.constant 0 : index
    %24 = vector.load %arg7[%c0_14, %c0_15] : memref<128x128xbf16, #tpu.memory_space<vmem>>, vector<128x128xbf16>
    %cst_16 = arith.constant dense<0.000000e+00> : vector<8x128xf32>
    %25 = tpu.matmul %23, %24, %cst_16 {dimension_numbers = #tpu.dot_dimension_numbers<[1], [0], [0], [1], [0, 0, 1, 1], [], []>} : vector<8x128xbf16>, vector<128x128xbf16>, vector<8x128xf32> -> vector<8x128xf32>
    %c0_17 = arith.constant 0 : index
    %c0_18 = arith.constant 0 : index
    %26 = vector.load %arg8[%c0_17, %c0_18] : memref<1x128xf32, #tpu.memory_space<vmem>>, vector<1x128xf32>
    %27 = vector.broadcast %26 : vector<1x128xf32> to vector<8x128xf32>
    %28 = arith.addf %25, %27 : vector<8x128xf32>
    %cst_19 = arith.constant 0.000000e+00 : f32
    %29 = vector.broadcast %cst_19 : f32 to vector<8x128xf32>
    %30 = arith.maximumf %28, %29 : vector<8x128xf32>
    %31 = arith.truncf %30 : vector<8x128xf32> to vector<8x128xbf16>
    %c0_20 = arith.constant 0 : index
    %c0_21 = arith.constant 0 : index
    %32 = vector.load %arg9[%c0_20, %c0_21] : memref<128x1024xbf16, #tpu.memory_space<vmem>>, vector<128x1024xbf16>
    %cst_22 = arith.constant dense<0.000000e+00> : vector<8x1024xf32>
    %33 = tpu.matmul %31, %32, %cst_22 {dimension_numbers = #tpu.dot_dimension_numbers<[1], [0], [0], [1], [0, 0, 1, 1], [], []>} : vector<8x128xbf16>, vector<128x1024xbf16>, vector<8x1024xf32> -> vector<8x1024xf32>
    %c0_23 = arith.constant 0 : index
    %c0_24 = arith.constant 0 : index
    %34 = vector.load %arg10[%c0_23, %c0_24] : memref<1x1024xf32, #tpu.memory_space<vmem>>, vector<1x1024xf32>
    %35 = vector.broadcast %34 : vector<1x1024xf32> to vector<8x1024xf32>
    %36 = arith.addf %33, %35 : vector<8x1024xf32>
    %cst_25 = arith.constant 5.000000e-01 : f32
    %37 = vector.broadcast %cst_25 : f32 to vector<8x1024xf32>
    %38 = arith.mulf %37, %36 : vector<8x1024xf32>
    %39 = math.tanh %38 : vector<8x1024xf32>
    %cst_26 = arith.constant 1.000000e+00 : f32
    %40 = vector.broadcast %cst_26 : f32 to vector<8x1024xf32>
    %41 = arith.addf %40, %39 : vector<8x1024xf32>
    %cst_27 = arith.constant 5.000000e-01 : f32
    %42 = vector.broadcast %cst_27 : f32 to vector<8x1024xf32>
    %43 = arith.mulf %42, %41 : vector<8x1024xf32>
    %44 = arith.truncf %43 : vector<8x1024xf32> to vector<8x1024xbf16>
    %c0_28 = arith.constant 0 : index
    %c0_29 = arith.constant 0 : index
    %45 = vector.load %arg11[%c0_28, %c0_29] : memref<8x1024xbf16, #tpu.memory_space<vmem>>, vector<8x1024xbf16>
    tpu.vector_store %arg11[%c0_28, %c0_29], %44 {strides = array<i32>} : memref<8x1024xbf16, #tpu.memory_space<vmem>>, vector<8x1024xbf16>,
    %46 = arith.truncf %14 : vector<8x256xf32> to vector<8x256xbf16>
    %c0_30 = arith.constant 0 : index
    %c0_31 = arith.constant 0 : index
    %47 = vector.load %arg12[%c0_30, %c0_31] : memref<8x256xbf16, #tpu.memory_space<vmem>>, vector<8x256xbf16>
    tpu.vector_store %arg12[%c0_30, %c0_31], %46 {strides = array<i32>} : memref<8x256xbf16, #tpu.memory_space<vmem>>, vector<8x256xbf16>,
    return
  }
  func.func @transform_0(%arg0: i32) -> (i32, i32) {
    %c0_i32 = arith.constant 0 : i32
    %c0_i32_0 = arith.constant 0 : i32
    return %arg0, %c0_i32 : i32, i32
  }
  func.func @transform_1(%arg0: i32) -> (i32, i32) {
    %c0_i32 = arith.constant 0 : i32
    %c0_i32_0 = arith.constant 0 : i32
    return %arg0, %c0_i32 : i32, i32
  }
  func.func @transform_2(%arg0: i32) -> (i32, i32) {
    %c0_i32 = arith.constant 0 : i32
    %c0_i32_0 = arith.constant 0 : i32
    %c0_i32_1 = arith.constant 0 : i32
    return %c0_i32, %c0_i32_0 : i32, i32
  }
  func.func @transform_3(%arg0: i32) -> (i32, i32) {
    %c0_i32 = arith.constant 0 : i32
    %c0_i32_0 = arith.constant 0 : i32
    %c0_i32_1 = arith.constant 0 : i32
    return %c0_i32, %c0_i32_0 : i32, i32
  }
  func.func @transform_4(%arg0: i32) -> (i32, i32) {
    %c0_i32 = arith.constant 0 : i32
    %c0_i32_0 = arith.constant 0 : i32
    %c0_i32_1 = arith.constant 0 : i32
    return %c0_i32, %c0_i32_0 : i32, i32
  }
  func.func @transform_5(%arg0: i32) -> (i32, i32) {
    %c0_i32 = arith.constant 0 : i32
    %c0_i32_0 = arith.constant 0 : i32
    %c0_i32_1 = arith.constant 0 : i32
    return %c0_i32, %c0_i32_0 : i32, i32
  }
  func.func @transform_6(%arg0: i32) -> (i32, i32) {
    %c0_i32 = arith.constant 0 : i32
    %c0_i32_0 = arith.constant 0 : i32
    %c0_i32_1 = arith.constant 0 : i32
    return %c0_i32, %c0_i32_0 : i32, i32
  }
  func.func @transform_7(%arg0: i32) -> (i32, i32) {
    %c0_i32 = arith.constant 0 : i32
    %c0_i32_0 = arith.constant 0 : i32
    %c0_i32_1 = arith.constant 0 : i32
    return %c0_i32, %c0_i32_0 : i32, i32
  }
  func.func @transform_8(%arg0: i32) -> (i32, i32) {
    %c0_i32 = arith.constant 0 : i32
    %c0_i32_0 = arith.constant 0 : i32
    %c0_i32_1 = arith.constant 0 : i32
    return %c0_i32, %c0_i32_0 : i32, i32
  }
  func.func @transform_9(%arg0: i32) -> (i32, i32) {
    %c0_i32 = arith.constant 0 : i32
    %c0_i32_0 = arith.constant 0 : i32
    %c0_i32_1 = arith.constant 0 : i32
    return %c0_i32, %c0_i32_0 : i32, i32
  }
  func.func @transform_10(%arg0: i32) -> (i32, i32) {
    %c0_i32 = arith.constant 0 : i32
    %c0_i32_0 = arith.constant 0 : i32
    return %arg0, %c0_i32 : i32, i32
  }
  func.func @transform_11(%arg0: i32) -> (i32, i32) {
    %c0_i32 = arith.constant 0 : i32
    %c0_i32_0 = arith.constant 0 : i32
    return %arg0, %c0_i32 : i32, i32
  }
}

</mosaic_0001>

<bundles_post_ra>
// kernel: tpu_custom_call.1
= control target key start
LH: loop header
LB: loop body
LE: loop exit
PB: predicated region body
PF: predicated region fallthrough
CT: control target
= control target key end

     0   :  { %17 = vsyncpa [#allocation3], 0  ;;  %s2629_s0 = inlined_call_operand.hbm [shape: f32[8,1024], index: 0, kind: input, shape index: {}]   ;;  %s2630_s1 = inlined_call_operand.hbm [shape: f32[8,128], index: 1, kind: input, shape index: {}]   ;;  %s2631_s2 = inlined_call_operand.hbm [shape: bf16[1024,128], index: 2, kind: input, shape index: {}]   ;;  %s2632_s3 = inlined_call_operand.vmem [shape: f32[1,128], index: 3, kind: input, shape index: {}]   ;;  %s2633_s4 = inlined_call_operand.hbm [shape: bf16[128,256], index: 4, kind: input, shape index: {}]   ;;  %s2634_s5 = inlined_call_operand.vmem [shape: f32[1,256], index: 5, kind: input, shape index: {}]   ;;  %s2635_s6 = inlined_call_operand.hbm [shape: bf16[128,128], index: 6, kind: input, shape index: {}]   ;;  %s2636_s7 = inlined_call_operand.vmem [shape: f32[1,128], index: 7, kind: input, shape index: {}]   ;;  %s2637_s8 = inlined_call_operand.hbm [shape: bf16[128,1024], index: 8, kind: input, shape index: {}]   ;;  %s2638_s9 = inlined_call_operand.vmem [shape: f32[1,1024], index: 9, kind: input, shape index: {}]   ;;  %s2639_s10 = inlined_call_operand.hbm [shape: bf16[8,1024], index: 10, kind: output, shape index: {0}]   ;;  %s2640_s11 = inlined_call_operand.hbm [shape: bf16[8,256], index: 11, kind: output, shape index: {1}]  }
   0x1   :  { %18 = vsyncpa [#allocation6], 0 }
   0x2   :  { %19 = vsyncpa [#allocation9], 0 }
   0x3   :  { %20 = vsyncpa [#allocation12], 0 }
   0x4   :  { %21 = vsyncpa [#allocation4], 0 }
   0x5   :  { %22 = vsyncpa [#allocation15], 0  ;;  %s2383_s17 = smov [#allocation5]   ;;  %s2384_s19 = smov [#allocation8]  }
   0x6   :  { %s39_s18 = sshll.u32 %s2383_s17, 4  ;;  %s62_s20 = sshll.u32 %s2384_s19, 4  ;;  %s40_s18 = int_to_ptr.vmem [resolvable:$true] %s39_s18  ;;  %s2460_s20 = int_to_ptr.vmem [resolvable:$true] %s62_s20 }
   0x7   :  { %s2195_s23 = scalar_lea.hbm %s2630_s1, 128 }
   0x8   :  { %p2196_p0 = scmp.ne.s32.totalorder %s2630_s1, %s2195_s23  ;;  %p2199_p1 = scmp.lt.u32.totalorder %s2195_s23, %s2630_s1 }
   0xa   :  { %p2201_p2 = pnand %p2199_p1, %p2196_p0 }
   0xc   :  { %2204 = shalt.err (!%p2201_p2)
}
   0xd   :  { %s2205_s28 = scalar_lea.vmem %s40_s18, 128  ;;  %p2210_p4 = scmp.lt.s32.totalorder %s40_s18, %s40_s18 }
   0xe   :  { %p2206_p3 = scmp.ne.s32.totalorder %s40_s18, %s2205_s28  ;;  %p2211_p5 = scmp.lt.s32.totalorder %s2205_s28, %s2205_s28 }
  0x10   :  { %p2212_p6 = por %p2211_p5, %p2210_p4 }
  0x12   :  { %p2213_p7 = pnand %p2212_p6, %p2206_p3 }
  0x14   :  { %2216 = shalt.err (!%p2213_p7)
}
  0x15   :  { %42 = dma.hbm_to_vmem [thread:$0]  %s2630_s1, 128, %s40_s18, [#allocation6]  }
  0x16   :  { %s2217_s14 = scalar_lea.hbm %s2633_s4, 2048 }
  0x17   :  { %p2218_p8 = scmp.ne.s32.totalorder %s2633_s4, %s2217_s14  ;;  %p2221_p9 = scmp.lt.u32.totalorder %s2217_s14, %s2633_s4 }
  0x19   :  { %p2223_p10 = pnand %p2221_p9, %p2218_p8 }
  0x1b   :  { %2226 = shalt.err (!%p2223_p10)
}
  0x1c   :  { %s2227_s21 = scalar_lea.vmem %s2460_s20, 2048  ;;  %p2232_p12 = scmp.lt.s32.totalorder %s2460_s20, %s2460_s20 }
  0x1d   :  { %p2228_p11 = scmp.ne.s32.totalorder %s2460_s20, %s2227_s21  ;;  %p2233_p13 = scmp.lt.s32.totalorder %s2227_s21, %s2227_s21 }
  0x1f   :  { %p2234_p0 = por %p2233_p13, %p2232_p12 }
  0x21   :  { %p2235_p1 = pnand %p2234_p0, %p2228_p11 }
  0x23   :  { %2238 = shalt.err (!%p2235_p1)
}
  0x24   :  { %s2385_s1 = smov 128   ;;  %s2386_s18 = smov 8  }
  0x25   :  { %68 = dma.hbm_to_vmem [thread:$0]  %s2633_s4, 2048, %s2460_s20, [#allocation9], %s2385_s1, %s2385_s1, %s2386_s18  }
  0x26   :  { %s2387_s24 = smov [#allocation2]   ;;  %s2388_s26 = smov [#allocation7]  }
  0x27   :  { %s29_s25 = sshll.u32 %s2387_s24, 4  ;;  %s48_s27 = sshll.u32 %s2388_s26, 4  ;;  %s30_s25 = int_to_ptr.vmem [resolvable:$true] %s29_s25  ;;  %s2491_s27 = int_to_ptr.vmem [resolvable:$true] %s48_s27 }
  0x28   :  { %s2239_s30 = scalar_lea.hbm %s2629_s0, 1024 }
  0x29   :  { %p2240_p2 = scmp.ne.s32.totalorder %s2629_s0, %s2239_s30  ;;  %p2243_p3 = scmp.lt.u32.totalorder %s2239_s30, %s2629_s0 }
  0x2b   :  { %p2245_p4 = pnand %p2243_p3, %p2240_p2 }
  0x2d   :  { %2248 = shalt.err (!%p2245_p4)
}
  0x2e   :  { %s2249_s4 = scalar_lea.vmem %s30_s25, 1024  ;;  %p2254_p6 = scmp.lt.s32.totalorder %s30_s25, %s30_s25 }
  0x2f   :  { %p2250_p5 = scmp.ne.s32.totalorder %s30_s25, %s2249_s4  ;;  %p2255_p7 = scmp.lt.s32.totalorder %s2249_s4, %s2249_s4 }
  0x31   :  { %p2256_p8 = por %p2255_p7, %p2254_p6 }
  0x33   :  { %p2257_p9 = pnand %p2256_p8, %p2250_p5 }
  0x35   :  { %2260 = shalt.err (!%p2257_p9)
}
  0x36   :  { %32 = dma.hbm_to_vmem [thread:$0]  %s2629_s0, 1024, %s30_s25, [#allocation3]  }
  0x37   :  { %s2261_s21 = scalar_lea.hbm %s2631_s2, 8192 }
  0x38   :  { %p2262_p10 = scmp.ne.s32.totalorder %s2631_s2, %s2261_s21  ;;  %p2265_p11 = scmp.lt.u32.totalorder %s2261_s21, %s2631_s2 }
  0x3a   :  { %p2267_p12 = pnand %p2265_p11, %p2262_p10 }
  0x3c   :  { %2270 = shalt.err (!%p2267_p12)
}
  0x3d   :  { %s2271_s24 = scalar_lea.vmem %s2491_s27, 8192  ;;  %p2276_p0 = scmp.lt.s32.totalorder %s2491_s27, %s2491_s27 }
  0x3e   :  { %p2272_p13 = scmp.ne.s32.totalorder %s2491_s27, %s2271_s24  ;;  %p2277_p1 = scmp.lt.s32.totalorder %s2271_s24, %s2271_s24 }
  0x40   :  { %p2278_p2 = por %p2277_p1, %p2276_p0 }
  0x42   :  { %p2279_p3 = pnand %p2278_p2, %p2272_p13 }
  0x44   :  { %2282 = shalt.err (!%p2279_p3)
}
  0x45   :  { %s2389_s0 = smov 64   ;;  %s2390_s25 = smov 4  }
  0x46   :  { %54 = dma.hbm_to_vmem [thread:$0]  %s2631_s2, 8192, %s2491_s27, [#allocation6], %s2389_s0, %s2389_s0, %s2390_s25  }
  0x47   :  { %s2391_s29 = smov [#allocation10]   ;;  %s2392_s12 = smov [#allocation11]  }
  0x48   :  { %s76_s30 = sshll.u32 %s2391_s29, 4  ;;  %s90_s13 = sshll.u32 %s2392_s12, 4  ;;  %s77_s30 = int_to_ptr.vmem [resolvable:$true] %s76_s30  ;;  %s2522_s13 = int_to_ptr.vmem [resolvable:$true] %s90_s13 }
  0x49   :  { %s2283_s4 = scalar_lea.hbm %s2635_s6, 1024 }
  0x4a   :  { %p2284_p4 = scmp.ne.s32.totalorder %s2635_s6, %s2283_s4  ;;  %p2287_p5 = scmp.lt.u32.totalorder %s2283_s4, %s2635_s6 }
  0x4c   :  { %p2289_p6 = pnand %p2287_p5, %p2284_p4 }
  0x4e   :  { %2292 = shalt.err (!%p2289_p6)
}
  0x4f   :  { %s2293_s2 = scalar_lea.vmem %s77_s30, 1024  ;;  %p2298_p8 = scmp.lt.s32.totalorder %s77_s30, %s77_s30 }
  0x50   :  { %p2294_p7 = scmp.ne.s32.totalorder %s77_s30, %s2293_s2  ;;  %p2299_p9 = scmp.lt.s32.totalorder %s2293_s2, %s2293_s2 }
  0x52   :  { %p2300_p10 = por %p2299_p9, %p2298_p8 }
  0x54   :  { %p2301_p11 = pnand %p2300_p10, %p2294_p7 }
  0x56   :  { %2304 = shalt.err (!%p2301_p11)
}
  0x57   :  { %82 = dma.hbm_to_vmem [thread:$0]  %s2635_s6, 1024, %s77_s30, [#allocation9], %s2389_s0, %s2389_s0, %s2390_s25  }
  0x58   :  { %s2305_s22 = scalar_lea.hbm %s2637_s8, 8192 }
  0x59   :  { %p2306_p12 = scmp.ne.s32.totalorder %s2637_s8, %s2305_s22  ;;  %p2309_p13 = scmp.lt.u32.totalorder %s2305_s22, %s2637_s8 }
  0x5b   :  { %p2311_p0 = pnand %p2309_p13, %p2306_p12 }
  0x5d   :  { %2314 = shalt.err (!%p2311_p0)
}
  0x5e   :  { %s2315_s29 = scalar_lea.vmem %s2522_s13, 8192  ;;  %p2320_p2 = scmp.lt.s32.totalorder %s2522_s13, %s2522_s13 }
  0x5f   :  { %p2316_p1 = scmp.ne.s32.totalorder %s2522_s13, %s2315_s29  ;;  %p2321_p3 = scmp.lt.s32.totalorder %s2315_s29, %s2315_s29 }
  0x61   :  { %p2322_p4 = por %p2321_p3, %p2320_p2 }
  0x63   :  { %p2323_p5 = pnand %p2322_p4, %p2316_p1 }
  0x65   :  { %2326 = shalt.err (!%p2323_p5)
}
  0x66   :  { %s2393_s6 = smov 512   ;;  %s2394_s0 = smov 32  }
  0x67   :  { %96 = dma.hbm_to_vmem [thread:$0]  %s2637_s8, 8192, %s2522_s13, [#allocation12], %s2393_s6, %s2393_s6, %s2394_s0  }
  0x68   :  { %2371 = dma.done.wait [#allocation3], 1024  }
  0x69   :  { %2372 = vsyncadd [#allocation3], 4294966272 }
  0x6a   :  { %2373 = dma.done.wait [#allocation6], 8320  }
  0x6b   :  { %2374 = vsyncadd [#allocation6], 4294958976 }
  0x6c   :  { %2375 = dma.done.wait [#allocation9], 3072  }
  0x6d   :  { %2376 = vsyncadd [#allocation9], 4294964224 }
  0x6e   :  { %2377 = dma.done.wait [#allocation12], 8192  }
  0x6f   :  { %2378 = vsyncadd [#allocation12], 4294959104  ;;  %v2081_v0 = vld [vmem:[#allocation7 + $0x40] sm:$0xff]   ;;  %v2085_v4 = vld [vmem:[#allocation7 + $0x48] sm:$0xff]   ;;  %vm2397_vm0 = vmmov 0  }
  0x70   :  { %v2082_v1 = vld [vmem:[#allocation7 + $0xc0] sm:$0xff]   ;;  %1947 = vmatprep.subr.bf16.mxu0 %v2081_v0  ;;  %v2086_v5 = vld [vmem:[#allocation7 + $0xc8] sm:$0xff]   ;;  %v2089_v8 = vld [vmem:[#allocation7 + $0x50] sm:$0xff]  }
  0x71   :  { %v2083_v2 = vld [vmem:[#allocation7] sm:$0xff]   ;;  %1969 = vmatprep.subr.bf16.mxu1 %v2082_v1  ;;  %v2087_v6 = vld [vmem:[#allocation7 + $0x8] sm:$0xff]   ;;  %v2090_v9 = vld [vmem:[#allocation7 + $0xd0] sm:$0xff]  }
  0x72   :  { %v2084_v3 = vld [vmem:[#allocation7 + $0x80] sm:$0xff]   ;;  %1948 = vmatpush3.bf16.msra.mxu0 %v2083_v2  ;;  %v2088_v7 = vld [vmem:[#allocation7 + $0x88] sm:$0xff]   ;;  %v2091_v10 = vld [vmem:[#allocation7 + $0x10] sm:$0xff]  }
  0x73   :  { %1970 = vmatpush3.bf16.msra.mxu1 %v2084_v3  ;;  %1949 = vmatprep.subr.bf16.mxu0 %v2085_v4  ;;  %v2092_v11 = vld [vmem:[#allocation7 + $0x90] sm:$0xff]   ;;  %v2093_v12 = vld [vmem:[#allocation7 + $0x58] sm:$0xff]   ;;  %v2097_v16 = vld [vmem:[#allocation7 + $0x60] sm:$0xff]  }
  0x74   :  { %1971 = vmatprep.subr.bf16.mxu1 %v2086_v5  ;;  %v2094_v13 = vld [vmem:[#allocation7 + $0xd8] sm:$0xff]   ;;  %v2098_v17 = vld [vmem:[#allocation7 + $0xe0] sm:$0xff]   ;;  %v2101_v20 = vld [vmem:[#allocation7 + $0x68] sm:$0xff]  }
  0x75   :  { %v2095_v14 = vld [vmem:[#allocation7 + $0x18] sm:$0xff]   ;;  %v2099_v18 = vld [vmem:[#allocation7 + $0x20] sm:$0xff]   ;;  %v2102_v21 = vld [vmem:[#allocation7 + $0xe8] sm:$0xff]  }
  0x76   :  { %1950 = vmatpush3.bf16.msra.mxu0 %v2087_v6  ;;  %v2096_v15 = vld [vmem:[#allocation7 + $0x98] sm:$0xff]   ;;  %v2100_v19 = vld [vmem:[#allocation7 + $0xa0] sm:$0xff]   ;;  %v2103_v22 = vld [vmem:[#allocation7 + $0x28] sm:$0xff]  }
  0x77   :  { %1972 = vmatpush3.bf16.msra.mxu1 %v2088_v7  ;;  %1951 = vmatprep.subr.bf16.mxu0 %v2089_v8  ;;  %v2104_v23 = vld [vmem:[#allocation7 + $0xa8] sm:$0xff]   ;;  %v2105_v24 = vld [vmem:[#allocation7 + $0x70] sm:$0xff]   ;;  %v2109_v28 = vld [vmem:[#allocation7 + $0x78] sm:$0xff]  }
  0x78   :  { %1973 = vmatprep.subr.bf16.mxu1 %v2090_v9  ;;  %v2106_v25 = vld [vmem:[#allocation7 + $0xf0] sm:$0xff]   ;;  %v2110_v29 = vld [vmem:[#allocation7 + $0xf8] sm:$0xff]   ;;  %v119_v32 = vld [vmem:[#allocation2 + $0x8] sm:$0xff] }
  0x79   :  { %v2107_v26 = vld [vmem:[#allocation7 + $0x30] sm:$0xff]   ;;  %v2111_v30 = vld [vmem:[#allocation7 + $0x38] sm:$0xff]   ;;  %v127_v35 = vpack.c.bf16 %v119_v32, %v119_v32  ;;  %v120_v38 = vld [vmem:[#allocation2 + $0x10] sm:$0xff]  ;;  %v2395_v32 = vmov 0  }
  0x7a   :  { %1952 = vmatpush3.bf16.msra.mxu0 %v2091_v10  ;;  %v2108_v27 = vld [vmem:[#allocation7 + $0xb0] sm:$0xff]   ;;  %v2112_v31 = vld [vmem:[#allocation7 + $0xb8] sm:$0xff]   ;;  %v128_v39 = vpack.c.bf16 %v120_v38, %v120_v38  ;;  %v2113_v40 = vld [vmem:[#allocation7 + $0x140] sm:$0xff]  }
  0x7b   :  { %1974 = vmatpush3.bf16.msra.mxu1 %v2092_v11  ;;  %1953 = vmatprep.subr.bf16.mxu0 %v2093_v12  ;;  %v121_v33 = vld [vmem:[#allocation2 + $0x18] sm:$0xff]  ;;  %v118_v34 = vld [vmem:[#allocation2] sm:$0xff]  ;;  %v2114_v41 = vld [vmem:[#allocation7 + $0x1c0] sm:$0xff]  }
  0x7c   :  { %1975 = vmatprep.subr.bf16.mxu1 %v2094_v13  ;;  %v129_v36 = vpack.c.bf16 %v121_v33, %v121_v33  ;;  %v126_v37 = vpack.c.bf16 %v118_v34, %v118_v34  ;;  %685 = vmatprep.mubr.bf16.mxu0 %v127_v35  ;;  %v2115_v42 = vld [vmem:[#allocation7 + $0x100] sm:$0xff]   ;;  %v2117_v44 = vld [vmem:[#allocation7 + $0x148] sm:$0xff]   ;;  %v2121_v48 = vld [vmem:[#allocation7 + $0x150] sm:$0xff]   ;;  %v2396_v34 = vmov 0.0  }
  0x7d   :  { %v2116_v43 = vld [vmem:[#allocation7 + $0x180] sm:$0xff]   ;;  %v2118_v45 = vld [vmem:[#allocation7 + $0x1c8] sm:$0xff]   ;;  %v2122_v49 = vld [vmem:[#allocation7 + $0x1d0] sm:$0xff]  }
  0x7e   :  { %1954 = vmatpush3.bf16.msra.mxu0 %v2095_v14  ;;  %725 = vmatprep.mubr.bf16.mxu1 %v129_v36  ;;  %v2119_v46 = vld [vmem:[#allocation7 + $0x108] sm:$0xff]   ;;  %v2123_v50 = vld [vmem:[#allocation7 + $0x110] sm:$0xff]   ;;  %v2125_v52 = vld [vmem:[#allocation7 + $0x158] sm:$0xff]  }
  0x7f   :  { %1976 = vmatpush3.bf16.msra.mxu1 %v2096_v15  ;;  %1955 = vmatprep.subr.bf16.mxu0 %v2097_v16  ;;  %v2120_v47 = vld [vmem:[#allocation7 + $0x188] sm:$0xff]   ;;  %v2124_v51 = vld [vmem:[#allocation7 + $0x190] sm:$0xff]   ;;  %v2126_v53 = vld [vmem:[#allocation7 + $0x1d8] sm:$0xff]  }
  0x80   :  { %1977 = vmatprep.subr.bf16.mxu1 %v2098_v17  ;;  %v2127_v54 = vld [vmem:[#allocation7 + $0x118] sm:$0xff]   ;;  %v2129_v56 = vld [vmem:[#allocation7 + $0x160] sm:$0xff]   ;;  %v2133_v60 = vld [vmem:[#allocation7 + $0x168] sm:$0xff]  }
  0x81   :  { %v2128_v55 = vld [vmem:[#allocation7 + $0x198] sm:$0xff]   ;;  %v2130_v57 = vld [vmem:[#allocation7 + $0x1e0] sm:$0xff]   ;;  %v2134_v61 = vld [vmem:[#allocation7 + $0x1e8] sm:$0xff]  }
  0x82   :  { %1956 = vmatpush3.bf16.msra.mxu0 %v2099_v18  ;;  %v2131_v58 = vld [vmem:[#allocation7 + $0x120] sm:$0xff]   ;;  %v2135_v62 = vld [vmem:[#allocation7 + $0x128] sm:$0xff]   ;;  %v2137_v0 = vld [vmem:[#allocation7 + $0x170] sm:$0xff]  }
  0x83   :  { %1978 = vmatpush3.bf16.msra.mxu1 %v2100_v19  ;;  %1957 = vmatprep.subr.bf16.mxu0 %v2101_v20  ;;  %v2132_v59 = vld [vmem:[#allocation7 + $0x1a0] sm:$0xff]   ;;  %v2136_v63 = vld [vmem:[#allocation7 + $0x1a8] sm:$0xff]   ;;  %v2138_v1 = vld [vmem:[#allocation7 + $0x1f0] sm:$0xff]  }
  0x84   :  { %1979 = vmatprep.subr.bf16.mxu1 %v2102_v21  ;;  %v2139_v2 = vld [vmem:[#allocation7 + $0x130] sm:$0xff]   ;;  %v2141_v4 = vld [vmem:[#allocation7 + $0x178] sm:$0xff]   ;;  %v123_v8 = vld [vmem:[#allocation2 + $0x28] sm:$0xff] }
  0x85   :  { %v2140_v3 = vld [vmem:[#allocation7 + $0x1b0] sm:$0xff]   ;;  %v2142_v5 = vld [vmem:[#allocation7 + $0x1f8] sm:$0xff]   ;;  %v131_v10 = vpack.c.bf16 %v123_v8, %v123_v8  ;;  %v124_v13 = vld [vmem:[#allocation2 + $0x30] sm:$0xff] }
  0x86   :  { %1958 = vmatpush3.bf16.msra.mxu0 %v2103_v22  ;;  %v2143_v6 = vld [vmem:[#allocation7 + $0x138] sm:$0xff]   ;;  %v125_v9 = vld [vmem:[#allocation2 + $0x38] sm:$0xff]  ;;  %v132_v15 = vpack.c.bf16 %v124_v13, %v124_v13  ;;  %v2145_v16 = vld [vmem:[#allocation8] ss:$8 sps:$4 sm:$0xff]  }
  0x87   :  { %1980 = vmatpush3.bf16.msra.mxu1 %v2104_v23  ;;  %1959 = vmatprep.subr.bf16.mxu0 %v2105_v24  ;;  %v2144_v7 = vld [vmem:[#allocation7 + $0x1b8] sm:$0xff]   ;;  %v133_v11 = vpack.c.bf16 %v125_v9, %v125_v9  ;;  %v2147_v17 = vld [vmem:[#allocation8 + $0x4] ss:$8 sps:$4 sm:$0xff]   ;;  %v2151_v21 = vld [vmem:[#allocation8 + $0x20] ss:$8 sps:$4 sm:$0xff]  }
  0x88   :  { %1981 = vmatprep.subr.bf16.mxu1 %v2106_v25  ;;  %v122_v12 = vld [vmem:[#allocation2 + $0x20] sm:$0xff]  ;;  %v2153_v20 = vld [vmem:[#allocation8 + $0x24] ss:$8 sps:$4 sm:$0xff]   ;;  %v2157_v25 = vld [vmem:[#allocation8 + $0x40] ss:$8 sps:$4 sm:$0xff]  }
  0x89   :  { %v130_v14 = vpack.c.bf16 %v122_v12, %v122_v12  ;;  %v2150_v18 = vld [vmem:[#allocation8 + $0x14] ss:$8 sps:$4 sm:$0xff]   ;;  %v2148_v19 = vld [vmem:[#allocation8 + $0x10] ss:$8 sps:$4 sm:$0xff]   ;;  %v2159_v24 = vld [vmem:[#allocation8 + $0x44] ss:$8 sps:$4 sm:$0xff]  }
  0x8a   :  { %1960 = vmatpush3.bf16.msra.mxu0 %v2107_v26  ;;  %v2156_v22 = vld [vmem:[#allocation8 + $0x34] ss:$8 sps:$4 sm:$0xff]   ;;  %v2154_v23 = vld [vmem:[#allocation8 + $0x30] ss:$8 sps:$4 sm:$0xff]   ;;  %v2169_v33 = vld [vmem:[#allocation10] sm:$0xff]  }
  0x8b   :  { %1982 = vmatpush3.bf16.msra.mxu1 %v2108_v27  ;;  %1961 = vmatprep.subr.bf16.mxu0 %v2109_v28  ;;  %v2162_v26 = vld [vmem:[#allocation8 + $0x54] ss:$8 sps:$4 sm:$0xff]   ;;  %v2160_v27 = vld [vmem:[#allocation8 + $0x50] ss:$8 sps:$4 sm:$0xff]   ;;  %v2165_v28 = vld [vmem:[#allocation8 + $0x64] ss:$8 sps:$4 sm:$0xff]  }
  0x8c   :  { %1983 = vmatprep.subr.bf16.mxu1 %v2110_v29  ;;  %v2163_v29 = vld [vmem:[#allocation8 + $0x60] ss:$8 sps:$4 sm:$0xff]   ;;  %v1783_v38 = vld [vmem:[%s2632_s3] ss:$0 sm:$0xff] }
  0x8d   :  { %v2170_v35 = vld [vmem:[#allocation10 + $0x8] sm:$0xff]   ;;  %v1096_v12 = vld [vmem:[#allocation11 + $0x60] sm:$0xff] }
  0x8e   :  { %1962 = vmatpush3.bf16.msra.mxu0 %v2111_v30  ;;  %v2168_v30 = vld [vmem:[#allocation8 + $0x74] ss:$8 sps:$4 sm:$0xff]  }
  0x8f   :  { %1984 = vmatpush3.bf16.msra.mxu1 %v2112_v31  ;;  %1991 = vmatprep.subr.bf16.mxu0 %v2113_v40  ;;  %v2166_v31 = vld [vmem:[#allocation8 + $0x70] ss:$8 sps:$4 sm:$0xff]  }
  0x90   :  { %2013 = vmatprep.subr.bf16.mxu1 %v2114_v41 }
  0x91   :  { %686 = vmatmul.mubr.bf16.vlgmr.msra.gmra.mrb[0].mxu0 %v126_v37 }
  0x92   :  { %726 = vmatmul.mubr.bf16.vlgmr.msra.gmra.mrb[0].mxu1 %v128_v39  ;;  %1992 = vmatpush3.bf16.msra.mxu0 %v2115_v42 }
  0x93   :  { %2014 = vmatpush3.bf16.msra.mxu1 %v2116_v43  ;;  %1993 = vmatprep.subr.bf16.mxu0 %v2117_v44 }
  0x94   :  { %2015 = vmatprep.subr.bf16.mxu1 %v2118_v45  ;;  %765 = vmatprep.mubr.bf16.mxu0 %v131_v10  ;;  %v2560_v10 = vld [vmem:[#allocation11 + $0x28] sm:$0xff] }
  0x95   :  { %805 = vmatprep.mubr.bf16.mxu1 %v133_v11  ;;  %v1092_v11 = vld [vmem:[#allocation11 + $0x40] sm:$0xff] }
  0x96   :  { %1994 = vmatpush3.bf16.msra.mxu0 %v2119_v46 }
  0x97   :  { %2016 = vmatpush3.bf16.msra.mxu1 %v2120_v47  ;;  %1995 = vmatprep.subr.bf16.mxu0 %v2121_v48 }
  0x98   :  { %2017 = vmatprep.subr.bf16.mxu1 %v2122_v49 }
  0x9a   :  { %1996 = vmatpush3.bf16.msra.mxu0 %v2123_v50 }
  0x9b   :  { %2018 = vmatpush3.bf16.msra.mxu1 %v2124_v51  ;;  %1997 = vmatprep.subr.bf16.mxu0 %v2125_v52 }
  0x9c   :  { %2019 = vmatprep.subr.bf16.mxu1 %v2126_v53 }
  0x9e   :  { %1998 = vmatpush3.bf16.msra.mxu0 %v2127_v54 }
  0x9f   :  { %2020 = vmatpush3.bf16.msra.mxu1 %v2128_v55  ;;  %1999 = vmatprep.subr.bf16.mxu0 %v2129_v56 }
  0xa0   :  { %2021 = vmatprep.subr.bf16.mxu1 %v2130_v57 }
  0xa2   :  { %2000 = vmatpush3.bf16.msra.mxu0 %v2131_v58 }
  0xa3   :  { %2022 = vmatpush3.bf16.msra.mxu1 %v2132_v59  ;;  %2001 = vmatprep.subr.bf16.mxu0 %v2133_v60 }
  0xa4   :  { %2023 = vmatprep.subr.bf16.mxu1 %v2134_v61 }
  0xa6   :  { %2002 = vmatpush3.bf16.msra.mxu0 %v2135_v62 }
  0xa7   :  { %2024 = vmatpush3.bf16.msra.mxu1 %v2136_v63  ;;  %2003 = vmatprep.subr.bf16.mxu0 %v2137_v0  ;;  %v2171_v63 = vld [vmem:[#allocation10 + $0x10] sm:$0xff]   ;;  %v2172_v0 = vld [vmem:[#allocation10 + $0x18] sm:$0xff]  }
  0xa8   :  { %2025 = vmatprep.subr.bf16.mxu1 %v2138_v1  ;;  %v2173_v1 = vld [vmem:[#allocation10 + $0x20] sm:$0xff]  }
  0xaa   :  { %2004 = vmatpush3.bf16.msra.mxu0 %v2139_v2  ;;  %v2174_v2 = vld [vmem:[#allocation10 + $0x28] sm:$0xff]  }
  0xab   :  { %2026 = vmatpush3.bf16.msra.mxu1 %v2140_v3  ;;  %2005 = vmatprep.subr.bf16.mxu0 %v2141_v4  ;;  %v2175_v3 = vld [vmem:[#allocation10 + $0x30] sm:$0xff]   ;;  %v2176_v4 = vld [vmem:[#allocation10 + $0x38] sm:$0xff]  }
  0xac   :  { %2027 = vmatprep.subr.bf16.mxu1 %v2142_v5  ;;  %v1084_v5 = vld [vmem:[#allocation11] sm:$0xff] }
  0xae   :  { %2006 = vmatpush3.bf16.msra.mxu0 %v2143_v6  ;;  %v1088_v6 = vld [vmem:[#allocation11 + $0x20] sm:$0xff] }
  0xaf   :  { %2028 = vmatpush3.bf16.msra.mxu1 %v2144_v7  ;;  %923 = vmatprep.subr.bf16.mxu0 %v2147_v17  ;;  %v2558_v7 = vld [vmem:[#allocation11 + $0x8] sm:$0xff]  ;;  %v1873_v8 = vcombine.low %v1084_v5, %v1088_v6  ;;  %v1874_v9 = vcombine.high %v1084_v5, %v1088_v6  ;;  %v1100_v17 = vld [vmem:[#allocation11 + $0x80] sm:$0xff] }
  0xb0   :  { %2044 = vmatprep.subr.bf16.mxu1 %v2396_v34  ;;  %v1875_v13 = vcombine.low %v2558_v7, %v2560_v10  ;;  %v1117_v6 = vld [vmem:[#allocation11 + $0x108] sm:$0xff] }
  0xb1   :  { %766 = vmatmul.mubr.bf16.vlgmr.msra.gmra.mrb[4].mxu0 %v130_v14  ;;  %v1876_v14 = vcombine.high %v2558_v7, %v2560_v10  ;;  %v1129_v7 = vld [vmem:[#allocation11 + $0x168] sm:$0xff] }
  0xb2   :  { %806 = vmatmul.mubr.bf16.vlgmr.msra.gmra.mrb[4].mxu1 %v132_v15  ;;  %924 = vmatpush1.bf16.msra.mxu0 %v2145_v16  ;;  %v1882_v15 = vcombine.high %v1092_v11, %v1096_v12  ;;  %v1881_v16 = vcombine.low %v1092_v11, %v1096_v12  ;;  %v1125_v12 = vld [vmem:[#allocation11 + $0x148] sm:$0xff] }
  0xb3   :  { %925 = vmatprep.subr.bf16.mxu0 %v2150_v18  ;;  %955 = vmatprep.mubr.bf16.mxu0 %v2395_v32  ;;  %v1104_v18 = vld [vmem:[#allocation11 + $0xa0] sm:$0xff] }
  0xb4   :  { %2045 = vmatpush3.bf16.msra.mxu1 %v2169_v33  ;;  %2060 = vmatprep.mubr.msk.bf16.mxu1 %vm2397_vm0, %v2396_v34 }
  0xb5   :  { %2046 = vmatprep.subr.bf16.mxu1 %v2396_v34 }
  0xb6   :  { %926 = vmatpush1.bf16.msra.mxu0 %v2148_v19  ;;  %v1890_v19 = vcombine.high %v1100_v17, %v1104_v18 }
  0xb7   :  { %927 = vmatprep.subr.bf16.mxu0 %v2153_v20  ;;  %v1889_v20 = vcombine.low %v1100_v17, %v1104_v18 }
  0xb8   :  { %2047 = vmatpush3.bf16.msra.mxu1 %v2170_v35  ;;  %v1136_v35 = vld [vmem:[#allocation11 + $0x1a0] sm:$0xff] }
  0xb9   :  { %2048 = vmatprep.subr.bf16.mxu1 %v2396_v34 }
  0xba   :  { %928 = vmatpush1.bf16.msra.mxu0 %v2151_v21  ;;  %v1108_v21 = vld [vmem:[#allocation11 + $0xc0] sm:$0xff] }
  0xbb   :  { %929 = vmatprep.subr.bf16.mxu0 %v2156_v22  ;;  %v1112_v22 = vld [vmem:[#allocation11 + $0xe0] sm:$0xff] }
  0xbc   :  { %2049 = vmatpush3.bf16.msra.mxu1 %v2171_v63  ;;  %v1105_v63 = vld [vmem:[#allocation11 + $0xa8] sm:$0xff] }
  0xbd   :  { %2050 = vmatprep.subr.bf16.mxu1 %v2396_v34 }
  0xbe   :  { %930 = vmatpush1.bf16.msra.mxu0 %v2154_v23  ;;  %v1898_v23 = vcombine.high %v1108_v21, %v1112_v22 }
  0xbf   :  { %931 = vmatprep.subr.bf16.mxu0 %v2159_v24  ;;  %v1897_v24 = vcombine.low %v1108_v21, %v1112_v22  ;;  %v1141_v21 = vld [vmem:[#allocation11 + $0x1c8] sm:$0xff] }
  0xc0   :  { %2051 = vmatpush3.bf16.msra.mxu1 %v2172_v0 }
  0xc1   :  { %2052 = vmatprep.subr.bf16.mxu1 %v2396_v34 }
  0xc2   :  { %932 = vmatpush1.bf16.msra.mxu0 %v2157_v25  ;;  %v1116_v25 = vld [vmem:[#allocation11 + $0x100] sm:$0xff] }
  0xc3   :  { %933 = vmatprep.subr.bf16.mxu0 %v2162_v26  ;;  %v1120_v26 = vld [vmem:[#allocation11 + $0x120] sm:$0xff] }
  0xc4   :  { %2053 = vmatpush3.bf16.msra.mxu1 %v2173_v1 }
  0xc5   :  { %2054 = vmatprep.subr.bf16.mxu1 %v2396_v34 }
  0xc6   :  { %934 = vmatpush1.bf16.msra.mxu0 %v2160_v27  ;;  %v1906_v27 = vcombine.high %v1116_v25, %v1120_v26 }
  0xc7   :  { %935 = vmatprep.subr.bf16.mxu0 %v2165_v28  ;;  %v1905_v28 = vcombine.low %v1116_v25, %v1120_v26 }
  0xc8   :  { %2055 = vmatpush3.bf16.msra.mxu1 %v2174_v2  ;;  %v1109_v2 = vld [vmem:[#allocation11 + $0xc8] sm:$0xff] }
  0xc9   :  { %2056 = vmatprep.subr.bf16.mxu1 %v2396_v34 }
  0xca   :  { %936 = vmatpush1.bf16.msra.mxu0 %v2163_v29  ;;  %v1124_v29 = vld [vmem:[#allocation11 + $0x140] sm:$0xff] }
  0xcb   :  { %937 = vmatprep.subr.bf16.mxu0 %v2168_v30  ;;  %v1128_v30 = vld [vmem:[#allocation11 + $0x160] sm:$0xff] }
  0xcc   :  { %2057 = vmatpush3.bf16.msra.mxu1 %v2175_v3  ;;  %v1913_v33 = vcombine.low %v1124_v29, %v1128_v30  ;;  %v1113_v3 = vld [vmem:[#allocation11 + $0xe8] sm:$0xff] }
  0xcd   :  { %2058 = vmatprep.subr.bf16.mxu1 %v2396_v34  ;;  %v1132_v34 = vld [vmem:[#allocation11 + $0x180] sm:$0xff]  ;;  %v1900_v5 = vcombine.high %v1109_v2, %v1113_v3 }
  0xce   :  { %938 = vmatpush1.bf16.msra.mxu0 %v2166_v31  ;;  %v1914_v31 = vcombine.high %v1124_v29, %v1128_v30  ;;  %v1087_v29 = vld [vmem:[#allocation11 + $0x18] sm:$0xff] }
  0xcf   :  { %1510 = vmatprep.subr.bf16.mxu0 %v1874_v9  ;;  %v1899_v9 = vcombine.low %v1109_v2, %v1113_v3 }
  0xd0   :  { %2059 = vmatpush3.bf16.msra.mxu1 %v2176_v4 }
  0xd1   :  { %1551 = vmatprep.subr.bf16.mxu1 %v1876_v14  ;;  %v1133_v14 = vld [vmem:[#allocation11 + $0x188] sm:$0xff] }
 0x164   :  { %v1963_v36 = vpop.f32.mrb[0].mxu0 }
 0x165   :  { %v1985_v37 = vpop.f32.mrb[0].mxu1  ;;  %v1964_v39 = vpop.f32.mrb[1].mxu0 }
 0x166   :  { %v1986_v40 = vpop.f32.mrb[1].mxu1  ;;  %v1965_v41 = vadd.f32 %v1964_v39, %v1963_v36  ;;  %v1966_v43 = vpop.f32.mrb[2].mxu0  ;;  %v1922_v36 = vcombine.high %v1132_v34, %v1136_v35 }
 0x167   :  { %v1987_v42 = vadd.f32 %v1986_v40, %v1985_v37  ;;  %v1988_v44 = vpop.f32.mrb[2].mxu1  ;;  %v1967_v45 = vpop.f32.mrb[3].mxu0  ;;  %v1921_v37 = vcombine.low %v1132_v34, %v1136_v35 }
 0x168   :  { %v1989_v46 = vpop.f32.mrb[3].mxu1  ;;  %v688_v47 = vadd.f32 %v1965_v41, %v1783_v38  ;;  %v833_v38 = vlaneseq  ;;  %v831_v41 = vld [vmem:[%s2634_s5] sm:$0x3] }
 0x16a   :  { %v728_v48 = vadd.f32 %v1987_v42, %v688_v47  ;;  %v2566_v39 = vshrl.u32 %v833_v38, 7 }
 0x16c   :  { %v835_v40 = vsub.s32 0, %v2566_v39  ;;  %v839_v42 = vsub.s32 1, %v2566_v39 }
 0x16e   :  { %v836_v43 = vrot.slane %v831_v41, %v835_v40  ;;  %v840_v44 = vrot.slane %v831_v41, %v839_v42 }
 0x184   :  { %v2007_v49 = vpop.f32.mrb[4].mxu0 }
 0x185   :  { %v2029_v50 = vpop.f32.mrb[4].mxu1  ;;  %v2008_v51 = vpop.f32.mrb[5].mxu0 }
 0x186   :  { %v2009_v52 = vadd.f32 %v2008_v51, %v2007_v49  ;;  %v2030_v53 = vpop.f32.mrb[5].mxu1  ;;  %v2010_v54 = vpop.f32.mrb[6].mxu0 }
 0x187   :  { %v2031_v55 = vadd.f32 %v2030_v53, %v2029_v50  ;;  %v2032_v56 = vpop.f32.mrb[6].mxu1  ;;  %v2011_v57 = vpop.f32.mrb[7].mxu0  ;;  %v967_v54 = vld [vmem:[#allocation5] sm:$0xff] }
 0x188   :  { %v768_v58 = vadd.f32 %v2009_v52, %v728_v48  ;;  %v2033_v59 = vpop.f32.mrb[7].mxu1  ;;  %v1093_v57 = vld [vmem:[#allocation11 + $0x48] sm:$0xff] }
 0x18a   :  { %v808_v60 = vadd.f32 %v2031_v55, %v768_v58  ;;  %v1097_v58 = vld [vmem:[#allocation11 + $0x68] sm:$0xff] }
 0x18b   :  { %v1883_v0 = vcombine.low %v1093_v57, %v1097_v58 }
 0x18c   :  { %v813_v61 = vmax.f32 %v808_v60, 0.0 }
 0x18e   :  { %v814_v62 = vpack.c.bf16 %v813_v61, %v813_v61  ;;  %v1884_v61 = vcombine.high %v1093_v57, %v1097_v58 }
 0x190   :  { %956 = vmatmul.mubr.bf16.vlgmr.msra.gmra.mrb[8].mxu0 %v814_v62  ;;  %v1101_v62 = vld [vmem:[#allocation11 + $0x88] sm:$0xff] }
 0x191   :  { %1542 = vmatprep.mubr.bf16.mxu0 %v2395_v32  ;;  %1511 = vmatpush1.bf16.msra.mxu0 %v1873_v8  ;;  %v1892_v1 = vcombine.high %v1101_v62, %v1105_v63  ;;  %v1891_v4 = vcombine.low %v1101_v62, %v1105_v63  ;;  %v1121_v8 = vld [vmem:[#allocation11 + $0x128] sm:$0xff]  ;;  %v1114_v62 = vld [vmem:[#allocation11 + $0xf0] sm:$0xff]  ;;  %v1111_v63 = vld [vmem:[#allocation11 + $0xd8] sm:$0xff] }
 0x192   :  { %1512 = vmatprep.subr.bf16.mxu0 %v1882_v15  ;;  %v1908_v11 = vcombine.high %v1117_v6, %v1121_v8  ;;  %v1907_v10 = vcombine.low %v1117_v6, %v1121_v8  ;;  %v1137_v15 = vld [vmem:[#allocation11 + $0x1a8] sm:$0xff]  ;;  %v1122_v6 = vld [vmem:[#allocation11 + $0x130] sm:$0xff]  ;;  %v1119_v8 = vld [vmem:[#allocation11 + $0x118] sm:$0xff] }
 0x193   :  { %v1924_v17 = vcombine.high %v1133_v14, %v1137_v15  ;;  %v1923_v18 = vcombine.low %v1133_v14, %v1137_v15  ;;  %v1127_v14 = vld [vmem:[#allocation11 + $0x158] sm:$0xff] }
 0x194   :  { %v1131_v15 = vld [vmem:[#allocation11 + $0x178] sm:$0xff] }
 0x195   :  { %1513 = vmatpush1.bf16.msra.mxu0 %v1881_v16  ;;  %v1915_v16 = vcombine.low %v1125_v12, %v1129_v7 }
 0x196   :  { %1514 = vmatprep.subr.bf16.mxu0 %v1890_v19  ;;  %v1140_v19 = vld [vmem:[#allocation11 + $0x1c0] sm:$0xff] }
 0x199   :  { %1515 = vmatpush1.bf16.msra.mxu0 %v1889_v20  ;;  %v1144_v20 = vld [vmem:[#allocation11 + $0x1e0] sm:$0xff] }
 0x19a   :  { %1516 = vmatprep.subr.bf16.mxu0 %v1898_v23  ;;  %v1930_v22 = vcombine.high %v1140_v19, %v1144_v20  ;;  %v1145_v23 = vld [vmem:[#allocation11 + $0x1e8] sm:$0xff] }
 0x19b   :  { %v1931_v25 = vcombine.low %v1141_v21, %v1145_v23  ;;  %v1932_v26 = vcombine.high %v1141_v21, %v1145_v23  ;;  %v1138_v21 = vld [vmem:[#allocation11 + $0x1b0] sm:$0xff]  ;;  %v1139_v23 = vld [vmem:[#allocation11 + $0x1b8] sm:$0xff] }
 0x19d   :  { %1517 = vmatpush1.bf16.msra.mxu0 %v1897_v24  ;;  %v1929_v24 = vcombine.low %v1140_v19, %v1144_v20  ;;  %v1920_v19 = vcombine.high %v1127_v14, %v1131_v15  ;;  %v1134_v20 = vld [vmem:[#allocation11 + $0x190] sm:$0xff] }
 0x19e   :  { %1518 = vmatprep.subr.bf16.mxu0 %v1906_v27  ;;  %v1086_v27 = vld [vmem:[#allocation11 + $0x10] sm:$0xff] }
 0x1a1   :  { %1519 = vmatpush1.bf16.msra.mxu0 %v1905_v28  ;;  %v1090_v28 = vld [vmem:[#allocation11 + $0x30] sm:$0xff] }
 0x1a2   :  { %1520 = vmatprep.subr.bf16.mxu0 %v1914_v31  ;;  %v1877_v30 = vcombine.low %v1086_v27, %v1090_v28  ;;  %v1878_v31 = vcombine.high %v1086_v27, %v1090_v28  ;;  %v1142_v28 = vld [vmem:[#allocation11 + $0x1d0] sm:$0xff] }
 0x1a5   :  { %1521 = vmatpush1.bf16.msra.mxu0 %v1913_v33  ;;  %v1091_v33 = vld [vmem:[#allocation11 + $0x38] sm:$0xff] }
 0x1a6   :  { %1522 = vmatprep.subr.bf16.mxu0 %v1922_v36  ;;  %v1879_v34 = vcombine.low %v1087_v29, %v1091_v33  ;;  %v1880_v35 = vcombine.high %v1087_v29, %v1091_v33  ;;  %v1864_v36 = vld [vmem:[%s2636_s7] ss:$0 sm:$0xff]  ;;  %v1146_v29 = vld [vmem:[#allocation11 + $0x1f0] sm:$0xff]  ;;  %v1925_v33 = vcombine.low %v1134_v20, %v1138_v21  ;;  %s2398_s7 = smov [#allocation14]  }
 0x1a7   :  { %s1767_s15 = sshll.u32 %s2398_s7, 4  ;;  %s1768_s15 = int_to_ptr.vmem [resolvable:$true] %s1767_s15 }
 0x1a8   :  { %s2327_s4 = scalar_lea.vmem %s1768_s15, 128  ;;  %p2332_p7 = scmp.lt.s32.totalorder %s1768_s15, %s1768_s15 }
 0x1a9   :  { %1523 = vmatpush1.bf16.msra.mxu0 %v1921_v37  ;;  %p2328_p6 = scmp.ne.s32.totalorder %s1768_s15, %s2327_s4  ;;  %p2333_p8 = scmp.lt.s32.totalorder %s2327_s4, %s2327_s4 }
 0x1aa   :  { %1524 = vmatprep.subr.bf16.mxu0 %v1930_v22  ;;  %v1135_v22 = vld [vmem:[#allocation11 + $0x198] sm:$0xff] }
 0x1ab   :  { %v1928_v27 = vcombine.high %v1135_v22, %v1139_v23  ;;  %p2334_p9 = por %p2333_p8, %p2332_p7 }
 0x1ad   :  { %1525 = vmatpush1.bf16.msra.mxu0 %v1929_v24  ;;  %p2335_p10 = pnand %p2334_p9, %p2328_p6 }
 0x1ae   :  { %1592 = vmatprep.subr.bf16.mxu0 %v1878_v31  ;;  %v1147_v31 = vld [vmem:[#allocation11 + $0x1f8] sm:$0xff] }
 0x263   :  { %v957_v45 = vpop.f32.mrb[8].mxu0 }
 0x264   :  { %v958_v46 = vadd.f32 %v957_v45, %v836_v43  ;;  %v959_v47 = vpop.f32.mrb[9].mxu0  ;;  %v1094_v43 = vld [vmem:[#allocation11 + $0x50] sm:$0xff] }
 0x265   :  { %v960_v48 = vadd.f32 %v959_v47, %v840_v44  ;;  %v961_v49 = vpop.f32.mrb[10].mxu0  ;;  %v1098_v45 = vld [vmem:[#allocation11 + $0x70] sm:$0xff]  ;;  %v1099_v47 = vld [vmem:[#allocation11 + $0x78] sm:$0xff] }
 0x266   :  { %v962_v50 = vpop.f32.mrb[11].mxu0  ;;  %v1885_v57 = vcombine.low %v1094_v43, %v1098_v45 }
 0x267   :  { %v964_v51 = vmul.f32 0.5, %v960_v48  ;;  %v1946_v52 = vpack.c.bf16 %v960_v48, %v958_v46 }
 0x269   :  { %v965_v53 = vmul.f32 1.442695, %v964_v51  ;;  %1750 = vst [vmem:[#allocation14] sm:$0xff] %v1946_v52  ;;  %v1886_v51 = vcombine.high %v1094_v43, %v1098_v45 }
 0x26b   :  { %2177 = vpow2.f32 %v965_v53  ;;  %v1102_v53 = vld [vmem:[#allocation11 + $0x90] sm:$0xff] }
 0x275   :  { %v2178_v55 = vpop.eup %2177 }
 0x276   :  { %v968_v56 = vmul.f32 %v2178_v55, %v967_v54  ;;  %v1106_v54 = vld [vmem:[#allocation11 + $0xb0] sm:$0xff]  ;;  %v1103_v55 = vld [vmem:[#allocation11 + $0x98] sm:$0xff] }
 0x278   :  { %v969_v59 = vadd.f32 %v968_v56, %v958_v46  ;;  %v1095_v46 = vld [vmem:[#allocation11 + $0x58] sm:$0xff] }
 0x279   :  { %v1888_v52 = vcombine.high %v1095_v46, %v1099_v47  ;;  %v1107_v56 = vld [vmem:[#allocation11 + $0xb8] sm:$0xff]  ;;  %v1887_v58 = vcombine.low %v1095_v46, %v1099_v47 }
 0x27a   :  { %v970_v60 = vpack.c.bf16 %v969_v59, %v969_v59  ;;  %v1894_v59 = vcombine.high %v1102_v53, %v1106_v54  ;;  %v1895_v2 = vcombine.low %v1103_v55, %v1107_v56 }
 0x27c   :  { %2061 = vmatmul.mubr.bf16.vlgmr.msra.gmra.mrb[8].mxu1 %v970_v60  ;;  %v1896_v60 = vcombine.high %v1103_v55, %v1107_v56 }
 0x27d   :  { %1552 = vmatpush1.bf16.msra.mxu1 %v1875_v13  ;;  %1583 = vmatprep.mubr.bf16.mxu1 %v2395_v32  ;;  %v1916_v13 = vcombine.high %v1125_v12, %v1129_v7 }
 0x27e   :  { %1553 = vmatprep.subr.bf16.mxu1 %v1884_v61  ;;  %v1110_v61 = vld [vmem:[#allocation11 + $0xd0] sm:$0xff] }
 0x27f   :  { %v1902_v3 = vcombine.high %v1110_v61, %v1114_v62 }
 0x281   :  { %1554 = vmatpush1.bf16.msra.mxu1 %v1883_v0  ;;  %v1115_v0 = vld [vmem:[#allocation11 + $0xf8] sm:$0xff] }
 0x282   :  { %1555 = vmatprep.subr.bf16.mxu1 %v1892_v1  ;;  %v1893_v1 = vcombine.low %v1102_v53, %v1106_v54  ;;  %v1903_v12 = vcombine.low %v1111_v63, %v1115_v0 }
 0x285   :  { %1556 = vmatpush1.bf16.msra.mxu1 %v1891_v4  ;;  %v1904_v4 = vcombine.high %v1111_v63, %v1115_v0 }
 0x286   :  { %1557 = vmatprep.subr.bf16.mxu1 %v1900_v5  ;;  %v1118_v5 = vld [vmem:[#allocation11 + $0x110] sm:$0xff] }
 0x287   :  { %v1910_v7 = vcombine.high %v1118_v5, %v1122_v6 }
 0x289   :  { %1558 = vmatpush1.bf16.msra.mxu1 %v1899_v9  ;;  %v1123_v9 = vld [vmem:[#allocation11 + $0x138] sm:$0xff] }
 0x28a   :  { %1559 = vmatprep.subr.bf16.mxu1 %v1908_v11  ;;  %v1901_v11 = vcombine.low %v1110_v61, %v1114_v62 }
 0x28d   :  { %1560 = vmatpush1.bf16.msra.mxu1 %v1907_v10  ;;  %v1126_v10 = vld [vmem:[#allocation11 + $0x150] sm:$0xff] }
 0x28e   :  { %1561 = vmatprep.subr.bf16.mxu1 %v1916_v13  ;;  %v1130_v13 = vld [vmem:[#allocation11 + $0x170] sm:$0xff] }
 0x28f   :  { %v1917_v24 = vcombine.low %v1126_v10, %v1130_v13 }
 0x291   :  { %1562 = vmatpush1.bf16.msra.mxu1 %v1915_v16  ;;  %v1909_v16 = vcombine.low %v1118_v5, %v1122_v6 }
 0x292   :  { %1563 = vmatprep.subr.bf16.mxu1 %v1924_v17  ;;  %v1911_v17 = vcombine.low %v1119_v8, %v1123_v9 }
 0x295   :  { %1564 = vmatpush1.bf16.msra.mxu1 %v1923_v18  ;;  %v1918_v18 = vcombine.high %v1126_v10, %v1130_v13 }
 0x296   :  { %1565 = vmatprep.subr.bf16.mxu1 %v1932_v26  ;;  %v1926_v26 = vcombine.high %v1134_v20, %v1138_v21 }
 0x299   :  { %1566 = vmatpush1.bf16.msra.mxu1 %v1931_v25  ;;  %v1919_v25 = vcombine.low %v1127_v14, %v1131_v15 }
 0x29a   :  { %1633 = vmatprep.subr.bf16.mxu1 %v1880_v35  ;;  %v1934_v35 = vcombine.high %v1142_v28, %v1146_v29 }
 0x34f   :  { %v1076_v37 = vpop.f32.mrb[8].mxu1 }
 0x350   :  { %v1077_v38 = vadd.f32 %v1864_v36, %v1076_v37  ;;  %v2062_v41 = vpop.f32.mrb[9].mxu1  ;;  %v1933_v37 = vcombine.low %v1142_v28, %v1146_v29 }
 0x351   :  { %v1079_v44 = vpop.f32.mrb[10].mxu1 }
 0x352   :  { %v1082_v48 = vmax.f32 %v1077_v38, 0.0  ;;  %v2063_v49 = vpop.f32.mrb[11].mxu1 }
 0x354   :  { %v2584_v50 = vpack.c.bf16 %v1082_v48, %v1082_v48 }
 0x356   :  { %1543 = vmatmul.mubr.bf16.vlgmr.msra.gmra.mrb[12].mxu0 %v2584_v50  ;;  %1584 = vmatmul.mubr.bf16.vlgmr.msra.gmra.mrb[12].mxu1 %v2584_v50 }
 0x357   :  { %1593 = vmatpush1.bf16.msra.mxu0 %v1877_v30  ;;  %1634 = vmatpush1.bf16.msra.mxu1 %v1879_v34  ;;  %v1143_v30 = vld [vmem:[#allocation11 + $0x1d8] sm:$0xff]  ;;  %v1927_v34 = vcombine.low %v1135_v22, %v1139_v23 }
 0x358   :  { %1594 = vmatprep.subr.bf16.mxu0 %v1886_v51  ;;  %1635 = vmatprep.subr.bf16.mxu1 %v1888_v52  ;;  %v1936_v36 = vcombine.high %v1143_v30, %v1147_v31  ;;  %v1935_v38 = vcombine.low %v1143_v30, %v1147_v31 }
 0x359   :  { %1624 = vmatprep.mubr.bf16.mxu0 %v2395_v32  ;;  %1665 = vmatprep.mubr.bf16.mxu1 %v2395_v32  ;;  %v1912_v32 = vcombine.high %v1119_v8, %v1123_v9 }
 0x35b   :  { %1595 = vmatpush1.bf16.msra.mxu0 %v1885_v57  ;;  %1636 = vmatpush1.bf16.msra.mxu1 %v1887_v58 }
 0x35c   :  { %1596 = vmatprep.subr.bf16.mxu0 %v1894_v59  ;;  %1637 = vmatprep.subr.bf16.mxu1 %v1896_v60 }
 0x35f   :  { %1597 = vmatpush1.bf16.msra.mxu0 %v1893_v1  ;;  %1638 = vmatpush1.bf16.msra.mxu1 %v1895_v2 }
 0x360   :  { %1598 = vmatprep.subr.bf16.mxu0 %v1902_v3  ;;  %1639 = vmatprep.subr.bf16.mxu1 %v1904_v4 }
 0x363   :  { %1599 = vmatpush1.bf16.msra.mxu0 %v1901_v11  ;;  %1640 = vmatpush1.bf16.msra.mxu1 %v1903_v12 }
 0x364   :  { %1600 = vmatprep.subr.bf16.mxu0 %v1910_v7  ;;  %1641 = vmatprep.subr.bf16.mxu1 %v1912_v32 }
 0x367   :  { %1601 = vmatpush1.bf16.msra.mxu0 %v1909_v16  ;;  %1642 = vmatpush1.bf16.msra.mxu1 %v1911_v17 }
 0x368   :  { %1602 = vmatprep.subr.bf16.mxu0 %v1918_v18  ;;  %1643 = vmatprep.subr.bf16.mxu1 %v1920_v19 }
 0x36b   :  { %1603 = vmatpush1.bf16.msra.mxu0 %v1917_v24  ;;  %1644 = vmatpush1.bf16.msra.mxu1 %v1919_v25 }
 0x36c   :  { %1604 = vmatprep.subr.bf16.mxu0 %v1926_v26  ;;  %1645 = vmatprep.subr.bf16.mxu1 %v1928_v27 }
 0x36f   :  { %1605 = vmatpush1.bf16.msra.mxu0 %v1925_v33  ;;  %1646 = vmatpush1.bf16.msra.mxu1 %v1927_v34 }
 0x370   :  { %1606 = vmatprep.subr.bf16.mxu0 %v1934_v35  ;;  %1647 = vmatprep.subr.bf16.mxu1 %v1936_v36 }
 0x373   :  { %1607 = vmatpush1.bf16.msra.mxu0 %v1933_v37  ;;  %1648 = vmatpush1.bf16.msra.mxu1 %v1935_v38 }
 0x376   :  { %1625 = vmatmul.mubr.bf16.vlgmr.msra.gmra.mrb[16].mxu0 %v2584_v50  ;;  %1666 = vmatmul.mubr.bf16.vlgmr.msra.gmra.mrb[16].mxu1 %v2584_v50 }
 0x377   :  { %2338 = shalt.err (!%p2335_p10)
}
 0x378   :  { %s2339_s17 = scalar_lea.hbm %s2640_s11, 128 }
 0x379   :  { %p2340_p11 = scmp.ne.s32.totalorder %s2640_s11, %s2339_s17  ;;  %p2343_p12 = scmp.lt.u32.totalorder %s2339_s17, %s2640_s11 }
 0x37b   :  { %p2345_p13 = pnand %p2343_p12, %p2340_p11 }
 0x37d   :  { %2348 = shalt.err (!%p2345_p13)
}
 0x37e   :  { %1770 = dma.vmem_to_hbm [thread:$0]  %s1768_s15, 128, %s2640_s11, [#allocation15]   ;;  %v1160_v41 = vsub.s32 2, %v2566_v39  ;;  %v1148_v43 = vld [vmem:[%s2638_s9] sm:$0xff]  ;;  %v1164_v44 = vsub.s32 3, %v2566_v39  ;;  %v1168_v10 = vsub.s32 4, %v2566_v39 }
 0x37f   :  { %v1153_v45 = vrot.slane %v1148_v43, %v835_v40  ;;  %v1157_v47 = vrot.slane %v1148_v43, %v839_v42  ;;  %v1176_v13 = vsub.s32 6, %v2566_v39  ;;  %v1172_v14 = vsub.s32 5, %v2566_v39  ;;  %s2399_s9 = smov [#allocation13]  }
 0x380   :  { %v1161_v46 = vrot.slane %v1148_v43, %v1160_v41  ;;  %v1165_v48 = vrot.slane %v1148_v43, %v1164_v44  ;;  %v1180_v15 = vsub.s32 7, %v2566_v39  ;;  %v1169_v16 = vrot.slane %v1148_v43, %v1168_v10  ;;  %s1757_s11 = sshll.u32 %s2399_s9, 4  ;;  %s1758_s11 = int_to_ptr.vmem [resolvable:$true] %s1757_s11 }
 0x381   :  { %v1177_v17 = vrot.slane %v1148_v43, %v1176_v13  ;;  %v1173_v18 = vrot.slane %v1148_v43, %v1172_v14  ;;  %s2349_s24 = scalar_lea.vmem %s1758_s11, 512  ;;  %p2354_p1 = scmp.lt.s32.totalorder %s1758_s11, %s1758_s11 }
 0x382   :  { %v1181_v19 = vrot.slane %v1148_v43, %v1180_v15  ;;  %p2350_p0 = scmp.ne.s32.totalorder %s1758_s11, %s2349_s24  ;;  %p2355_p2 = scmp.lt.s32.totalorder %s2349_s24, %s2349_s24 }
 0x384   :  { %p2356_p3 = por %p2355_p2, %p2354_p1 }
 0x386   :  { %p2357_p4 = pnand %p2356_p3, %p2350_p0 }
 0x429   :  { %v1544_v49 = vpop.f32.mrb[12].mxu0  ;;  %v1585_v50 = vpop.f32.mrb[12].mxu1 }
 0x42a   :  { %v1545_v51 = vadd.f32 %v1544_v49, %v1153_v45  ;;  %v1586_v52 = vadd.f32 %v1585_v50, %v1161_v46  ;;  %v1546_v53 = vpop.f32.mrb[13].mxu0  ;;  %v1587_v54 = vpop.f32.mrb[13].mxu1 }
 0x42b   :  { %v1547_v55 = vadd.f32 %v1546_v53, %v1157_v47  ;;  %v1588_v56 = vadd.f32 %v1587_v54, %v1165_v48  ;;  %v1548_v57 = vpop.f32.mrb[14].mxu0  ;;  %v1589_v58 = vpop.f32.mrb[14].mxu1 }
 0x42c   :  { %v1674_v59 = vmul.f32 0.5, %v1545_v51  ;;  %v1676_v60 = vmul.f32 0.5, %v1586_v52  ;;  %v1549_v61 = vpop.f32.mrb[15].mxu0  ;;  %v1590_v62 = vpop.f32.mrb[15].mxu1 }
 0x42d   :  { %v1675_v40 = vmul.f32 0.5, %v1547_v55  ;;  %v1677_v63 = vmul.f32 0.5, %v1588_v56 }
 0x42e   :  { %2179 = vtanh.f32 %v1674_v59 }
 0x42f   :  { %2181 = vtanh.f32 %v1676_v60 }
 0x430   :  { %2183 = vtanh.f32 %v1675_v40 }
 0x431   :  { %2185 = vtanh.f32 %v1677_v63 }
 0x438   :  { %v2180_v42 = vpop.eup %2179 }
 0x439   :  { %v2182_v0 = vpop.eup %2181  ;;  %v1690_v1 = vadd.f32 1.0, %v2180_v42 }
 0x43a   :  { %v2184_v2 = vpop.eup %2183  ;;  %v1692_v3 = vadd.f32 1.0, %v2182_v0 }
 0x43b   :  { %v2186_v4 = vpop.eup %2185  ;;  %v1698_v5 = vmul.f32 0.5, %v1690_v1  ;;  %v1691_v6 = vadd.f32 1.0, %v2184_v2 }
 0x43c   :  { %v1700_v8 = vmul.f32 0.5, %v1692_v3  ;;  %v1693_v9 = vadd.f32 1.0, %v2186_v4 }
 0x43d   :  { %v1699_v11 = vmul.f32 0.5, %v1691_v6 }
 0x43e   :  { %v1701_v12 = vmul.f32 0.5, %v1693_v9 }
 0x43f   :  { %v1942_v7 = vpack.c.bf16 %v1699_v11, %v1698_v5 }
 0x440   :  { %v1943_v32 = vpack.c.bf16 %v1701_v12, %v1700_v8 }
 0x441   :  { %1738 = vst [vmem:[#allocation13] sm:$0xff] %v1942_v7 }
 0x442   :  { %1739 = vst [vmem:[#allocation13 + $0x8] sm:$0xff] %v1943_v32 }
 0x449   :  { %v1626_v20 = vpop.f32.mrb[16].mxu0  ;;  %v1667_v21 = vpop.f32.mrb[16].mxu1 }
 0x44a   :  { %v1627_v22 = vadd.f32 %v1626_v20, %v1169_v16  ;;  %v1668_v23 = vadd.f32 %v1667_v21, %v1177_v17  ;;  %v1628_v24 = vpop.f32.mrb[17].mxu0  ;;  %v1669_v25 = vpop.f32.mrb[17].mxu1 }
 0x44b   :  { %v1629_v26 = vadd.f32 %v1628_v24, %v1173_v18  ;;  %v1670_v27 = vadd.f32 %v1669_v25, %v1181_v19  ;;  %v1630_v28 = vpop.f32.mrb[18].mxu0  ;;  %v1671_v29 = vpop.f32.mrb[18].mxu1 }
 0x44c   :  { %v1678_v30 = vmul.f32 0.5, %v1627_v22  ;;  %v1680_v31 = vmul.f32 0.5, %v1668_v23  ;;  %v1631_v33 = vpop.f32.mrb[19].mxu0  ;;  %v1672_v34 = vpop.f32.mrb[19].mxu1 }
 0x44d   :  { %v1679_v35 = vmul.f32 0.5, %v1629_v26  ;;  %v1681_v39 = vmul.f32 0.5, %v1670_v27 }
 0x44e   :  { %2187 = vtanh.f32 %v1678_v30 }
 0x44f   :  { %2189 = vtanh.f32 %v1680_v31 }
 0x450   :  { %2191 = vtanh.f32 %v1679_v35 }
 0x451   :  { %2193 = vtanh.f32 %v1681_v39 }
 0x458   :  { %v2188_v36 = vpop.eup %2187 }
 0x459   :  { %v2190_v37 = vpop.eup %2189  ;;  %v1694_v38 = vadd.f32 1.0, %v2188_v36 }
 0x45a   :  { %v2192_v41 = vpop.eup %2191  ;;  %v1696_v43 = vadd.f32 1.0, %v2190_v37 }
 0x45b   :  { %v2194_v44 = vpop.eup %2193  ;;  %v1702_v45 = vmul.f32 0.5, %v1694_v38  ;;  %v1695_v46 = vadd.f32 1.0, %v2192_v41 }
 0x45c   :  { %v1704_v47 = vmul.f32 0.5, %v1696_v43  ;;  %v1697_v48 = vadd.f32 1.0, %v2194_v44 }
 0x45d   :  { %v1703_v49 = vmul.f32 0.5, %v1695_v46 }
 0x45e   :  { %v1705_v50 = vmul.f32 0.5, %v1697_v48 }
 0x45f   :  { %v1944_v51 = vpack.c.bf16 %v1703_v49, %v1702_v45 }
 0x460   :  { %v1945_v52 = vpack.c.bf16 %v1705_v50, %v1704_v47 }
 0x461   :  { %1740 = vst [vmem:[#allocation13 + $0x10] sm:$0xff] %v1944_v51 }
 0x462   :  { %1741 = vst [vmem:[#allocation13 + $0x18] sm:$0xff] %v1945_v52 }
 0x463   :  { %2360 = shalt.err (!%p2357_p4)
}
 0x464   :  { %s2361_s29 = scalar_lea.hbm %s2639_s10, 512 }
 0x465   :  { %p2362_p5 = scmp.ne.s32.totalorder %s2639_s10, %s2361_s29  ;;  %p2365_p6 = scmp.lt.u32.totalorder %s2361_s29, %s2639_s10 }
 0x467   :  { %p2367_p7 = pnand %p2365_p6, %p2362_p5 }
 0x469   :  { %2370 = shalt.err (!%p2367_p7)
}
 0x46a   :  { %1760 = dma.vmem_to_hbm [thread:$0]  %s1758_s11, 512, %s2639_s10, [#allocation4]  }
 0x46b   :  { %2379 = dma.done.wait [#allocation4], 512  }
 0x46c   :  { %2380 = vsyncadd [#allocation4], 4294966784 }
 0x46d   :  { %2381 = dma.done.wait [#allocation15], 128  }
 0x46e   :  { %2382 = vsyncadd [#allocation15], 4294967168 }
 0x46f   :  { %1777 = vsyncpa [#allocation3], 1 }
 0x470   :  { %1778 = vsyncpa [#allocation6], 1 }
 0x471   :  { %1779 = vsyncpa [#allocation9], 1 }
 0x472   :  { %1780 = vsyncpa [#allocation12], 1 }
 0x473   :  { %1781 = vsyncpa [#allocation4], 1 }
 0x474   :  { %1782 = vsyncpa [#allocation15], 1 }

</bundles_post_ra>
